<compile_context>
chip_gen: v7x
topology: tpu7x:2x2x1
jax: 0.10.0
libtpu: 0.0.40
codegen_flags: <defaults>
</compile_context>

<pallas_src>
import functools
from typing import Optional

import jax
import jax.numpy as jnp
from jax.experimental import pallas as pl
from jax.experimental.pallas import tpu as pltpu


def _averager_kernel(*refs, batch_size, update_size, num_updates):
    """Gather-style overlap-add for one channel tile.

    refs (N > 1):  x_ref (B, Cc, N*U), state_ref (Cc, (N-1)*U),
                   out_ref (Cc, B*U),  new_state_ref (Cc, (N-1)*U)
    refs (N == 1): x_ref (B, Cc, U),   out_ref (Cc, B*U)
    """
    B, U, N = batch_size, update_size, num_updates
    if N > 1:
        x_ref, state_ref, out_ref, new_state_ref = refs
    else:
        x_ref, out_ref = refs
        state_ref = None
        new_state_ref = None

    inv_n = jnp.float32(1.0 / N)

    # Static (trace-time) loop over the B + N - 1 output chunks of size U.
    # Chunk k is covered by update windows b in [max(0, k-N+1), min(B-1, k)];
    # it is computed once and written exactly once (no zero-init, no RMW).
    for k in range(B + N - 1):
        b_lo = max(0, k - N + 1)
        b_hi = min(B - 1, k)

        j0 = k - b_lo
        acc = x_ref[b_lo, :, j0 * U:(j0 + 1) * U]
        for b in range(b_lo + 1, b_hi + 1):
            j = k - b
            acc = acc + x_ref[b, :, j * U:(j + 1) * U]
        acc = acc * inv_n

        # The torch module divides each state window by its coverage count and
        # scatter-adds it back at the same positions; summed over covering
        # windows that is algebraically the state itself, so add it once.
        # Chunks with k >= N-1 only ever see the zero padding -> nothing to add.
        if k < N - 1:
            acc = acc + state_ref[:, k * U:(k + 1) * U]

        # First B chunks form `output`, remaining N-1 chunks form `new_state`.
        if k < B:
            out_ref[:, k * U:(k + 1) * U] = acc
        else:
            new_state_ref[:, (k - B) * U:(k - B + 1) * U] = acc


def _choose_channel_tile(num_channels, batch_size, update_size, num_updates,
                         vmem_budget_bytes=24 * 1024 * 1024):
    """Largest channel tile whose double-buffered f32 blocks fit the budget."""
    W = num_updates * update_size
    S = (num_updates - 1) * update_size
    L = (batch_size + num_updates - 1) * update_size
    bytes_per_channel = 2 * 4 * (batch_size * W + 2 * S + L)  # 2x = double buffer
    max_cc = max(1, vmem_budget_bytes // bytes_per_channel)

    if num_channels <= max_cc:
        return num_channels
    candidates = [cc for cc in range(8, max_cc + 1, 8) if num_channels % cc == 0]
    if candidates:
        return max(candidates)
    # TODO(synk): no tile satisfies both the VMEM budget and the sublane (8)
    # divisibility rule; fall back to a single full-channel block and rely on
    # the vmem_limit headroom.  Pad num_channels to a multiple of 8 upstream
    # for best layout on very large problems.
    return num_channels


class OnlineAveragerPallas:
    """JAX/Pallas port of ml4gw's OnlineAverager (forward pass)."""

    def __init__(self, update_size: int, batch_size: int, num_updates: int,
                 num_channels: int, offset: Optional[int] = None,
                 channel_tile: Optional[int] = None):
        self.update_size = int(update_size)
        self.batch_size = int(batch_size)
        self.num_updates = int(num_updates)
        self.num_channels = int(num_channels)
        self.offset = offset

        self.batch_update_size = self.batch_size * self.update_size
        self.state_size = (self.num_updates - 1) * self.update_size
        self.window_size = self.num_updates * self.update_size
        self.total_size = self.batch_update_size + self.state_size  # (B+N-1)*U

        if channel_tile is None:
            channel_tile = _choose_channel_tile(
                self.num_channels, self.batch_size, self.update_size,
                self.num_updates)
        if self.num_channels % channel_tile != 0:
            raise ValueError("channel_tile must divide num_channels")
        self.channel_tile = int(channel_tile)

        self._kernel = functools.partial(
            _averager_kernel,
            batch_size=self.batch_size,
            update_size=self.update_size,
            num_updates=self.num_updates,
        )

    def get_initial_state(self):
        return jnp.zeros((self.num_channels, self.state_size), jnp.float32)

    def __call__(self, update, state=None):
        B, C = self.batch_size, self.num_channels
        N, U = self.num_updates, self.update_size
        W, S = self.window_size, self.state_size
        cc = self.channel_tile

        if state is None:
            state = self.get_initial_state()

        # Glue: slice the update tail (same indexing as the torch module).
        # Skip the slice entirely when it is a no-op.
        T = update.shape[-1]
        if self.offset is not None:
            x = update[:, :, T - W - self.offset: T - self.offset]
        elif T == W:
            x = update
        else:
            x = update[:, :, T - W:]
        x = x.astype(jnp.float32)
        state = state.astype(jnp.float32)

        in_specs = [pl.BlockSpec((B, cc, W), lambda i: (0, i, 0))]
        operands = [x]
        out_spec = pl.BlockSpec((cc, B * U), lambda i: (i, 0))

        if N > 1:
            in_specs.append(pl.BlockSpec((cc, S), lambda i: (i, 0)))
            operands.append(state)
            out_shape = (jax.ShapeDtypeStruct((C, B * U), jnp.float32),
                         jax.ShapeDtypeStruct((C, S), jnp.float32))
            out_specs = (out_spec, pl.BlockSpec((cc, S), lambda i: (i, 0)))
        else:
            out_shape = jax.ShapeDtypeStruct((C, B * U), jnp.float32)
            out_specs = out_spec

        result = pl.pallas_call(
            self._kernel,
            out_shape=out_shape,
            grid=(C // cc,),
            in_specs=in_specs,
            out_specs=out_specs,
            compiler_params=pltpu.CompilerParams(
                dimension_semantics=("parallel",),
                vmem_limit_bytes=32 * 1024 * 1024),
        )(*operands)

        if N == 1:
            return result, self.get_initial_state()
        output, new_state = result
        return output, new_state


def _forward_reference(update, state, *, update_size, batch_size, num_updates,
                       offset):
    """Pure-JAX literal translation of the torch forward (for verification)."""
    U, B, N = update_size, batch_size, num_updates
    C = update.shape[1]
    W = N * U
    L = (B + N - 1) * U
    T = update.shape[-1]

    if offset is not None:
        x = update[:, :, T - W - offset: T - offset]
    else:
        x = update[:, :, T - W:]
    x = x.astype(jnp.float32) / N

    state_p = jnp.pad(state.astype(jnp.float32), ((0, 0), (0, B * U)))

    # Coverage-count "weights" buffer, exactly as the torch scatter/sum/unfold.
    t = jnp.arange(L)
    starts = jnp.arange(B)[:, None] * U
    cover = (t[None, :] >= starts) & (t[None, :] < starts + W)
    w_full = cover.sum(axis=0).astype(jnp.float32)             # (L,)

    windowed = jnp.stack(
        [state_p[:, b * U:b * U + W] / w_full[b * U:b * U + W][None, :]
         for b in range(B)], axis=0)                            # (B, C, W)
    windowed = windowed + x

    padded = jnp.zeros((B, C, L), jnp.float32)
    for b in range(B):
        padded = padded.at[b, :, b * U:b * U + W].set(windowed[b])
    new = padded.sum(axis=0)

    if N == 1:
        return new, jnp.zeros((C, 0), jnp.float32)
    return new[:, :B * U], new[:, B * U:]


if __name__ == "__main__":
    configs = [
        # small, lane-unaligned, with offset
        dict(update_size=8, batch_size=4, num_updates=3, num_channels=4,
             offset=2, time1=40, channel_tile=None),
        # lane-aligned chunks (U multiple of 128), sublane-aligned channels
        dict(update_size=128, batch_size=4, num_updates=3, num_channels=8,
             offset=None, time1=448, channel_tile=None),
        # multi-tile channel grid (grid=(2,)) to exercise pipelining
        dict(update_size=64, batch_size=3, num_updates=2, num_channels=16,
             offset=None, time1=160, channel_tile=8),
        # num_updates == 1 branch (no state input / output)
        dict(update_size=16, batch_size=2, num_updates=1, num_channels=4,
             offset=None, time1=48, channel_tile=None),
        # no-op tail slice path (offset None, T1 == N*U)
        dict(update_size=32, batch_size=2, num_updates=4, num_channels=8,
             offset=None, time1=128, channel_tile=None),
    ]

    key = jax.random.PRNGKey(0)
    for cfg in configs:
        U, B = cfg["update_size"], cfg["batch_size"]
        N, C = cfg["num_updates"], cfg["num_channels"]

        key, k_upd, k_state = jax.random.split(key, 3)
        update = jax.random.normal(k_upd, (B, C, cfg["time1"]), jnp.float32)
        state = jax.random.normal(k_state, (C, (N - 1) * U), jnp.float32)

        averager = OnlineAveragerPallas(
            U, B, N, C, offset=cfg["offset"], channel_tile=cfg["channel_tile"])

        output, new_state = averager(update, state)
        output = jax.block_until_ready(output)
        new_state = jax.block_until_ready(new_state)

        out_ref, state_ref = _forward_reference(
            update, state, update_size=U, batch_size=B, num_updates=N,
            offset=cfg["offset"])

        assert output.shape == (C, B * U), (output.shape, cfg)
        assert new_state.shape == (C, (N - 1) * U), (new_state.shape, cfg)
        assert jnp.allclose(output, out_ref, rtol=1e-5, atol=1e-5), cfg
        assert jnp.allclose(new_state, state_ref, rtol=1e-5, atol=1e-5), cfg

    print("KERNEL_OK")
</pallas_src>

<mosaic_0001>
module attributes {stable_mosaic.version = 11 : i64} {
  func.func @_averager_kernel(%arg0: i32, %arg1: memref<4x4x24xf32, #tpu.memory_space<vmem>>, %arg2: memref<4x16xf32, #tpu.memory_space<vmem>>, %arg3: memref<4x32xf32, #tpu.memory_space<vmem>>, %arg4: memref<4x16xf32, #tpu.memory_space<vmem>>) attributes {dimension_semantics = [#tpu.dimension_semantics<parallel>], iteration_bounds = array<i64: 1>, scalar_prefetch = 0 : i64, scratch_operands = 0 : i64, tpu.core_type = #tpu.core_type<tc>, window_params = [{transform_indices = @transform_0, window_bounds = array<i64: 4, 4, 24>}, {transform_indices = @transform_1, window_bounds = array<i64: 4, 16>}, {transform_indices = @transform_2, window_bounds = array<i64: 4, 32>}, {transform_indices = @transform_3, window_bounds = array<i64: 4, 16>}]} {
    %c0 = arith.constant 0 : index
    %c0_0 = arith.constant 0 : index
    %c0_1 = arith.constant 0 : index
    %0 = vector.load %arg1[%c0, %c0_0, %c0_1] : memref<4x4x24xf32, #tpu.memory_space<vmem>>, vector<1x4x8xf32>
    %1 = vector.shape_cast %0 : vector<1x4x8xf32> to vector<4x8xf32>
    %cst = arith.constant 0.333333343 : f32
    %2 = vector.broadcast %cst : f32 to vector<4x8xf32>
    %3 = arith.mulf %1, %2 : vector<4x8xf32>
    %c0_2 = arith.constant 0 : index
    %c0_3 = arith.constant 0 : index
    %4 = vector.load %arg2[%c0_2, %c0_3] : memref<4x16xf32, #tpu.memory_space<vmem>>, vector<4x8xf32>
    %5 = arith.addf %3, %4 : vector<4x8xf32>
    %c0_4 = arith.constant 0 : index
    %c0_5 = arith.constant 0 : index
    %6 = vector.load %arg3[%c0_4, %c0_5] : memref<4x32xf32, #tpu.memory_space<vmem>>, vector<4x8xf32>
    tpu.vector_store %arg3[%c0_4, %c0_5], %5 {strides = array<i32>} : memref<4x32xf32, #tpu.memory_space<vmem>>, vector<4x8xf32>,
    %c0_6 = arith.constant 0 : index
    %c0_7 = arith.constant 0 : index
    %c8 = arith.constant 8 : index
    %7 = vector.load %arg1[%c0_6, %c0_7, %c8] : memref<4x4x24xf32, #tpu.memory_space<vmem>>, vector<1x4x8xf32>
    %8 = vector.shape_cast %7 : vector<1x4x8xf32> to vector<4x8xf32>
    %c1 = arith.constant 1 : index
    %c0_8 = arith.constant 0 : index
    %c0_9 = arith.constant 0 : index
    %9 = vector.load %arg1[%c1, %c0_8, %c0_9] : memref<4x4x24xf32, #tpu.memory_space<vmem>>, vector<1x4x8xf32>
    %10 = vector.shape_cast %9 : vector<1x4x8xf32> to vector<4x8xf32>
    %11 = arith.addf %8, %10 : vector<4x8xf32>
    %cst_10 = arith.constant 0.333333343 : f32
    %12 = vector.broadcast %cst_10 : f32 to vector<4x8xf32>
    %13 = arith.mulf %11, %12 : vector<4x8xf32>
    %c0_11 = arith.constant 0 : index
    %c8_12 = arith.constant 8 : index
    %14 = vector.load %arg2[%c0_11, %c8_12] : memref<4x16xf32, #tpu.memory_space<vmem>>, vector<4x8xf32>
    %15 = arith.addf %13, %14 : vector<4x8xf32>
    %c0_13 = arith.constant 0 : index
    %c8_14 = arith.constant 8 : index
    %16 = vector.load %arg3[%c0_13, %c8_14] : memref<4x32xf32, #tpu.memory_space<vmem>>, vector<4x8xf32>
    tpu.vector_store %arg3[%c0_13, %c8_14], %15 {strides = array<i32>} : memref<4x32xf32, #tpu.memory_space<vmem>>, vector<4x8xf32>,
    %c0_15 = arith.constant 0 : index
    %c0_16 = arith.constant 0 : index
    %c16 = arith.constant 16 : index
    %17 = vector.load %arg1[%c0_15, %c0_16, %c16] : memref<4x4x24xf32, #tpu.memory_space<vmem>>, vector<1x4x8xf32>
    %18 = vector.shape_cast %17 : vector<1x4x8xf32> to vector<4x8xf32>
    %c1_17 = arith.constant 1 : index
    %c0_18 = arith.constant 0 : index
    %c8_19 = arith.constant 8 : index
    %19 = vector.load %arg1[%c1_17, %c0_18, %c8_19] : memref<4x4x24xf32, #tpu.memory_space<vmem>>, vector<1x4x8xf32>
    %20 = vector.shape_cast %19 : vector<1x4x8xf32> to vector<4x8xf32>
    %21 = arith.addf %18, %20 : vector<4x8xf32>
    %c2 = arith.constant 2 : index
    %c0_20 = arith.constant 0 : index
    %c0_21 = arith.constant 0 : index
    %22 = vector.load %arg1[%c2, %c0_20, %c0_21] : memref<4x4x24xf32, #tpu.memory_space<vmem>>, vector<1x4x8xf32>
    %23 = vector.shape_cast %22 : vector<1x4x8xf32> to vector<4x8xf32>
    %24 = arith.addf %21, %23 : vector<4x8xf32>
    %cst_22 = arith.constant 0.333333343 : f32
    %25 = vector.broadcast %cst_22 : f32 to vector<4x8xf32>
    %26 = arith.mulf %24, %25 : vector<4x8xf32>
    %c0_23 = arith.constant 0 : index
    %c16_24 = arith.constant 16 : index
    %27 = vector.load %arg3[%c0_23, %c16_24] : memref<4x32xf32, #tpu.memory_space<vmem>>, vector<4x8xf32>
    tpu.vector_store %arg3[%c0_23, %c16_24], %26 {strides = array<i32>} : memref<4x32xf32, #tpu.memory_space<vmem>>, vector<4x8xf32>,
    %c1_25 = arith.constant 1 : index
    %c0_26 = arith.constant 0 : index
    %c16_27 = arith.constant 16 : index
    %28 = vector.load %arg1[%c1_25, %c0_26, %c16_27] : memref<4x4x24xf32, #tpu.memory_space<vmem>>, vector<1x4x8xf32>
    %29 = vector.shape_cast %28 : vector<1x4x8xf32> to vector<4x8xf32>
    %c2_28 = arith.constant 2 : index
    %c0_29 = arith.constant 0 : index
    %c8_30 = arith.constant 8 : index
    %30 = vector.load %arg1[%c2_28, %c0_29, %c8_30] : memref<4x4x24xf32, #tpu.memory_space<vmem>>, vector<1x4x8xf32>
    %31 = vector.shape_cast %30 : vector<1x4x8xf32> to vector<4x8xf32>
    %32 = arith.addf %29, %31 : vector<4x8xf32>
    %c3 = arith.constant 3 : index
    %c0_31 = arith.constant 0 : index
    %c0_32 = arith.constant 0 : index
    %33 = vector.load %arg1[%c3, %c0_31, %c0_32] : memref<4x4x24xf32, #tpu.memory_space<vmem>>, vector<1x4x8xf32>
    %34 = vector.shape_cast %33 : vector<1x4x8xf32> to vector<4x8xf32>
    %35 = arith.addf %32, %34 : vector<4x8xf32>
    %cst_33 = arith.constant 0.333333343 : f32
    %36 = vector.broadcast %cst_33 : f32 to vector<4x8xf32>
    %37 = arith.mulf %35, %36 : vector<4x8xf32>
    %c0_34 = arith.constant 0 : index
    %c24 = arith.constant 24 : index
    %38 = vector.load %arg3[%c0_34, %c24] : memref<4x32xf32, #tpu.memory_space<vmem>>, vector<4x8xf32>
    tpu.vector_store %arg3[%c0_34, %c24], %37 {strides = array<i32>} : memref<4x32xf32, #tpu.memory_space<vmem>>, vector<4x8xf32>,
    %c2_35 = arith.constant 2 : index
    %c0_36 = arith.constant 0 : index
    %c16_37 = arith.constant 16 : index
    %39 = vector.load %arg1[%c2_35, %c0_36, %c16_37] : memref<4x4x24xf32, #tpu.memory_space<vmem>>, vector<1x4x8xf32>
    %40 = vector.shape_cast %39 : vector<1x4x8xf32> to vector<4x8xf32>
    %c3_38 = arith.constant 3 : index
    %c0_39 = arith.constant 0 : index
    %c8_40 = arith.constant 8 : index
    %41 = vector.load %arg1[%c3_38, %c0_39, %c8_40] : memref<4x4x24xf32, #tpu.memory_space<vmem>>, vector<1x4x8xf32>
    %42 = vector.shape_cast %41 : vector<1x4x8xf32> to vector<4x8xf32>
    %43 = arith.addf %40, %42 : vector<4x8xf32>
    %cst_41 = arith.constant 0.333333343 : f32
    %44 = vector.broadcast %cst_41 : f32 to vector<4x8xf32>
    %45 = arith.mulf %43, %44 : vector<4x8xf32>
    %c0_42 = arith.constant 0 : index
    %c0_43 = arith.constant 0 : index
    %46 = vector.load %arg4[%c0_42, %c0_43] : memref<4x16xf32, #tpu.memory_space<vmem>>, vector<4x8xf32>
    tpu.vector_store %arg4[%c0_42, %c0_43], %45 {strides = array<i32>} : memref<4x16xf32, #tpu.memory_space<vmem>>, vector<4x8xf32>,
    %c3_44 = arith.constant 3 : index
    %c0_45 = arith.constant 0 : index
    %c16_46 = arith.constant 16 : index
    %47 = vector.load %arg1[%c3_44, %c0_45, %c16_46] : memref<4x4x24xf32, #tpu.memory_space<vmem>>, vector<1x4x8xf32>
    %48 = vector.shape_cast %47 : vector<1x4x8xf32> to vector<4x8xf32>
    %cst_47 = arith.constant 0.333333343 : f32
    %49 = vector.broadcast %cst_47 : f32 to vector<4x8xf32>
    %50 = arith.mulf %48, %49 : vector<4x8xf32>
    %c0_48 = arith.constant 0 : index
    %c8_49 = arith.constant 8 : index
    %51 = vector.load %arg4[%c0_48, %c8_49] : memref<4x16xf32, #tpu.memory_space<vmem>>, vector<4x8xf32>
    tpu.vector_store %arg4[%c0_48, %c8_49], %50 {strides = array<i32>} : memref<4x16xf32, #tpu.memory_space<vmem>>, vector<4x8xf32>,
    return
  }
  func.func @transform_0(%arg0: i32) -> (i32, i32, i32) {
    %c0_i32 = arith.constant 0 : i32
    %c0_i32_0 = arith.constant 0 : i32
    %c0_i32_1 = arith.constant 0 : i32
    return %c0_i32, %arg0, %c0_i32_0 : i32, i32, i32
  }
  func.func @transform_1(%arg0: i32) -> (i32, i32) {
    %c0_i32 = arith.constant 0 : i32
    %c0_i32_0 = arith.constant 0 : i32
    return %arg0, %c0_i32 : i32, i32
  }
  func.func @transform_2(%arg0: i32) -> (i32, i32) {
    %c0_i32 = arith.constant 0 : i32
    %c0_i32_0 = arith.constant 0 : i32
    return %arg0, %c0_i32 : i32, i32
  }
  func.func @transform_3(%arg0: i32) -> (i32, i32) {
    %c0_i32 = arith.constant 0 : i32
    %c0_i32_0 = arith.constant 0 : i32
    return %arg0, %c0_i32 : i32, i32
  }
}

</mosaic_0001>

<bundles_post_ra>
// kernel: tpu_custom_call.1
= control target key start
LH: loop header
LB: loop body
LE: loop exit
PB: predicated region body
PF: predicated region fallthrough
CT: control target
= control target key end

     0   :  { %9 = vsyncpa [#allocation3], 0  ;;  %s341_s0 = inlined_call_operand.hbm [shape: f32[4,4,24], index: 0, kind: input, shape index: {}]   ;;  %s342_s1 = inlined_call_operand.hbm [shape: f32[4,16], index: 1, kind: input, shape index: {}]   ;;  %s343_s2 = inlined_call_operand.hbm [shape: f32[4,32], index: 2, kind: output, shape index: {0}]   ;;  %s344_s3 = inlined_call_operand.hbm [shape: f32[4,16], index: 3, kind: output, shape index: {1}]  }
   0x1   :  { %10 = vsyncpa [#allocation6], 0 }
   0x2   :  { %11 = vsyncpa [#allocation4], 0 }
   0x3   :  { %12 = vsyncpa [#allocation9], 0  ;;  %s254_s12 = smov [#allocation2]   ;;  %s158_s16 = scalar_lea.hbm %s341_s0, 256 }
   0x4   :  { %s18_s13 = sshll.u32 %s254_s12, 4  ;;  %p159_p0 = scmp.ne.s32.totalorder %s341_s0, %s158_s16  ;;  %s19_s13 = int_to_ptr.vmem [resolvable:$true] %s18_s13 }
   0x5   :  { %p162_p1 = scmp.lt.u32.totalorder %s158_s16, %s341_s0 }
   0x7   :  { %p164_p2 = pnand %p162_p1, %p159_p0 }
   0x9   :  { %167 = shalt.err (!%p164_p2)
}
   0xa   :  { %s168_s21 = scalar_lea.vmem %s19_s13, 256  ;;  %p173_p4 = scmp.lt.s32.totalorder %s19_s13, %s19_s13 }
   0xb   :  { %p169_p3 = scmp.ne.s32.totalorder %s19_s13, %s168_s21  ;;  %p174_p5 = scmp.lt.s32.totalorder %s168_s21, %s168_s21 }
   0xd   :  { %p175_p6 = por %p174_p5, %p173_p4 }
   0xf   :  { %p176_p7 = pnand %p175_p6, %p169_p3 }
  0x11   :  { %179 = shalt.err (!%p176_p7)
}
  0x12   :  { %s255_s22 = smov 64   ;;  %s256_s23 = smov 4  }
  0x13   :  { %24 = dma.hbm_to_vmem [thread:$0]  %s341_s0, 256, %s19_s13, [#allocation3], %s255_s22, %s255_s22, %s256_s23  }
  0x14   :  { %s257_s26 = smov [#allocation5]   ;;  %s180_s30 = scalar_lea.hbm %s342_s1, 64 }
  0x15   :  { %s31_s27 = sshll.u32 %s257_s26, 4  ;;  %p181_p8 = scmp.ne.s32.totalorder %s342_s1, %s180_s30  ;;  %s32_s27 = int_to_ptr.vmem [resolvable:$true] %s31_s27 }
  0x16   :  { %p184_p9 = scmp.lt.u32.totalorder %s180_s30, %s342_s1 }
  0x18   :  { %p186_p10 = pnand %p184_p9, %p181_p8 }
  0x1a   :  { %189 = shalt.err (!%p186_p10)
}
  0x1b   :  { %s190_s8 = scalar_lea.vmem %s32_s27, 64  ;;  %p195_p12 = scmp.lt.s32.totalorder %s32_s27, %s32_s27 }
  0x1c   :  { %p191_p11 = scmp.ne.s32.totalorder %s32_s27, %s190_s8  ;;  %p196_p13 = scmp.lt.s32.totalorder %s190_s8, %s190_s8 }
  0x1e   :  { %p197_p0 = por %p196_p13, %p195_p12 }
  0x20   :  { %p198_p1 = pnand %p197_p0, %p191_p11 }
  0x22   :  { %201 = shalt.err (!%p198_p1)
}
  0x23   :  { %34 = dma.hbm_to_vmem [thread:$0]  %s342_s1, 64, %s32_s27, [#allocation6]  }
  0x24   :  { %246 = dma.done.wait [#allocation3], 256  }
  0x25   :  { %247 = vsyncadd [#allocation3], 4294967040 }
  0x26   :  { %248 = dma.done.wait [#allocation6], 64  }
  0x27   :  { %249 = vsyncadd [#allocation6], 4294967232  ;;  %v78_v0 = vld [vmem:[#allocation2 + $0x8] sm:$0xf]  ;;  %v85_v1 = vld [vmem:[#allocation2 + $0xc] sm:$0xf] }
  0x28   :  { %s258_s10 = smov 8   ;;  %s259_s11 = smov 16   ;;  %v99_v2 = vld [vmem:[#allocation2 + $0xc] sm:$0xf]  ;;  %v49_v3 = vld [vmem:[#allocation2 + $0x4] sm:$0xf] }
  0x29   :  { %80 = vrot.lane.b32.xlu0 %v78_v0, %s258_s10  ;;  %87 = vrot.lane.b32.xlu1 %v85_v1, %s259_s11  ;;  %v61_v4 = vld [vmem:[#allocation2 + $0x4] sm:$0xf]  ;;  %v68_v5 = vld [vmem:[#allocation2 + $0x8] sm:$0xf]  ;;  %v41_v6 = vld [vmem:[#allocation2] sm:$0xf] }
  0x2a   :  { %v42_v7 = vmul.f32 0.33333334, %v41_v6  ;;  %v43_v8 = vld [vmem:[#allocation5] sm:$0xf]  ;;  %vm45_vm0 = vcmask 60416   ;;  %vm58_vm1 = vcmask 126016  }
  0x2b   :  { %v77_v10 = vld [vmem:[#allocation2 + $0x4] sm:$0xf]  ;;  %v98_v14 = vld [vmem:[#allocation2 + $0x8] sm:$0xf]  ;;  %v47_v15 = vld [vmem:[#allocation2] sm:$0xf] }
  0x2c   :  { %v44_v9 = vadd.f32 %v43_v8, %v42_v7  ;;  %v111_v22 = vld [vmem:[#allocation2 + $0xc] sm:$0xf]  ;;  %v56_v23 = vld [vmem:[#allocation5] sm:$0xf]  ;;  %v60_v24 = vld [vmem:[#allocation2] sm:$0xf] }
  0x2d   :  { %101 = vrot.lane.b32.xlu0 %v99_v2, %s258_s10  ;;  %51 = vrot.lane.b32.xlu1 %v49_v3, %s258_s10  ;;  %s260_s1 = smov 112   ;;  %v112_v29 = vmul.f32 0.33333334, %v111_v22  ;;  %vm75_vm2 = vcmask 191616   ;;  %s261_s12 = smov 120   ;;  %vm96_vm3 = vcmask 257216  }
  0x2e   :  { %46 = vst.msk [vmem:[#allocation7] sm:$0xf] %vm45_vm0, %v44_v9  ;;  %s262_s13 = smov [#allocation7]   ;;  %s263_s15 = smov [#allocation8]  }
  0x2f   :  { %s124_s14 = sshll.u32 %s262_s13, 4  ;;  %s134_s16 = sshll.u32 %s263_s15, 4  ;;  %s125_s14 = int_to_ptr.vmem [resolvable:$true] %s124_s14  ;;  %s135_s16 = int_to_ptr.vmem [resolvable:$true] %s134_s16 }
  0x30   :  { %s202_s17 = scalar_lea.vmem %s125_s14, 64  ;;  %p207_p3 = scmp.lt.s32.totalorder %s125_s14, %s125_s14 }
  0x31   :  { %63 = vrot.lane.b32.xlu0 %v61_v4, %s258_s10  ;;  %70 = vrot.lane.b32.xlu1 %v68_v5, %s259_s11  ;;  %p203_p2 = scmp.ne.s32.totalorder %s125_s14, %s202_s17  ;;  %p208_p4 = scmp.lt.s32.totalorder %s202_s17, %s202_s17 }
  0x33   :  { %p209_p5 = por %p208_p4, %p207_p3 }
  0x35   :  { %p210_p6 = pnand %p209_p5, %p203_p2 }
  0x9b   :  { %v81_v11 = vpop.permute.xlu0 %80  ;;  %v88_v12 = vpop.permute.xlu1 %87 }
  0x9c   :  { %v83_v13 = vadd.f32 %v81_v11, %v77_v10 }
  0x9e   :  { %v90_v16 = vadd.f32 %v88_v12, %v83_v13 }
  0x9f   :  { %v102_v17 = vpop.permute.xlu0 %101  ;;  %v52_v18 = vpop.permute.xlu1 %51 }
  0xa0   :  { %v91_v19 = vmul.f32 0.33333334, %v90_v16  ;;  %v104_v20 = vadd.f32 %v102_v17, %v98_v14  ;;  %v54_v21 = vadd.f32 %v52_v18, %v47_v15 }
  0xa2   :  { %v105_v25 = vmul.f32 0.33333334, %v104_v20  ;;  %93 = vrot.lane.b32.xlu1 %v91_v19, %s258_s10  ;;  %v55_v26 = vmul.f32 0.33333334, %v54_v21 }
  0xa3   :  { %v64_v27 = vpop.permute.xlu0 %63  ;;  %v71_v28 = vpop.permute.xlu1 %70 }
  0xa4   :  { %107 = vrot.lane.b32.xlu0 %v105_v25, %s260_s1  ;;  %v57_v30 = vadd.f32 %v56_v23, %v55_v26  ;;  %v66_v31 = vadd.f32 %v64_v27, %v60_v24 }
  0xa6   :  { %v73_v32 = vadd.f32 %v71_v28, %v66_v31  ;;  %59 = vst.msk [vmem:[#allocation7] sm:$0xf] %vm58_vm1, %v57_v30 }
  0xa8   :  { %114 = vrot.lane.b32.xlu0 %v112_v29, %s261_s12  ;;  %v74_v33 = vmul.f32 0.33333334, %v73_v32 }
  0xaa   :  { %76 = vst.msk [vmem:[#allocation7] sm:$0xf] %vm75_vm2, %v74_v33 }
 0x114   :  { %v94_v34 = vpop.permute.xlu1 %93 }
 0x115   :  { %97 = vst.msk [vmem:[#allocation7] sm:$0xf] %vm96_vm3, %v94_v34 }
 0x116   :  { %v108_v35 = vpop.permute.xlu0 %107 }
 0x117   :  { %213 = shalt.err (!%p210_p6)
}
 0x118   :  { %s214_s20 = scalar_lea.hbm %s343_s2, 64 }
 0x119   :  { %p215_p7 = scmp.ne.s32.totalorder %s343_s2, %s214_s20  ;;  %p218_p8 = scmp.lt.u32.totalorder %s214_s20, %s343_s2 }
 0x11b   :  { %p220_p9 = pnand %p218_p8, %p215_p7 }
 0x11d   :  { %223 = shalt.err (!%p220_p9)
}
 0x11e   :  { %127 = dma.vmem_to_hbm [thread:$0]  %s125_s14, 64, %s343_s2, [#allocation4]   ;;  %110 = vst.msk [vmem:[#allocation8] sm:$0xf] %vm45_vm0, %v108_v35  ;;  %v115_v36 = vpop.permute.xlu0 %114 }
 0x11f   :  { %117 = vst.msk [vmem:[#allocation8] sm:$0xf] %vm58_vm1, %v115_v36  ;;  %s224_s27 = scalar_lea.vmem %s135_s16, 64  ;;  %p229_p11 = scmp.lt.s32.totalorder %s135_s16, %s135_s16 }
 0x120   :  { %p225_p10 = scmp.ne.s32.totalorder %s135_s16, %s224_s27  ;;  %p230_p12 = scmp.lt.s32.totalorder %s224_s27, %s224_s27 }
 0x122   :  { %p231_p13 = por %p230_p12, %p229_p11 }
 0x124   :  { %p232_p0 = pnand %p231_p13, %p225_p10 }
 0x126   :  { %235 = shalt.err (!%p232_p0)
}
 0x127   :  { %s236_s30 = scalar_lea.hbm %s344_s3, 64 }
 0x128   :  { %p237_p1 = scmp.ne.s32.totalorder %s344_s3, %s236_s30  ;;  %p240_p2 = scmp.lt.u32.totalorder %s236_s30, %s344_s3 }
 0x12a   :  { %p242_p3 = pnand %p240_p2, %p237_p1 }
 0x12c   :  { %245 = shalt.err (!%p242_p3)
}
 0x12d   :  { %137 = dma.vmem_to_hbm [thread:$0]  %s135_s16, 64, %s344_s3, [#allocation9]  }
 0x12e   :  { %250 = dma.done.wait [#allocation4], 64  }
 0x12f   :  { %251 = vsyncadd [#allocation4], 4294967232 }
 0x130   :  { %252 = dma.done.wait [#allocation9], 64  }
 0x131   :  { %253 = vsyncadd [#allocation9], 4294967232 }
 0x132   :  { %144 = vsyncpa [#allocation3], 1 }
 0x133   :  { %145 = vsyncpa [#allocation6], 1 }
 0x134   :  { %146 = vsyncpa [#allocation4], 1 }
 0x135   :  { %147 = vsyncpa [#allocation9], 1 }

</bundles_post_ra>
